<compile_context>
chip_gen: v7x
topology: tpu7x:2x2x1
jax: 0.10.0
libtpu: 0.0.40
codegen_flags: <defaults>
</compile_context>

<pallas_src>
import functools

import numpy as np
import jax
import jax.numpy as jnp
from jax.experimental import pallas as pl
from jax.experimental.pallas import tpu as pltpu


# ------------------------------------------------------------------ helpers --
def _full_spec(shape):
    nd = len(shape)
    return pl.BlockSpec(shape, lambda b, _nd=nd: (0,) * _nd)


def _batch_spec(shape):  # leading block dim of size 1, indexed by the batch grid
    nd = len(shape)
    return pl.BlockSpec(shape, lambda b, _nd=nd: (b,) + (0,) * (_nd - 1))


# ---------------------------------------------------------- fused ConvBlock --
def conv_block_kernel(stride, has_residual, *refs):
    if has_residual:
        (xp_ref, wdw_ref, bdw_ref, w2_ref, b2_ref,
         wres_ref, bres_ref, w3_ref, b3_ref, out_ref) = refs
    else:
        (xp_ref, wdw_ref, bdw_ref, w2_ref, b2_ref,
         w3_ref, b3_ref, out_ref) = refs

    L = xp_ref.shape[1] - 4            # original time length (zero pad of 2 each side)
    lout = out_ref.shape[1]            # strided output length = (L-1)//stride + 1

    xp = xp_ref[0]                     # (L+4, Cin)  zero-padded input
    x = xp[2:2 + L, :]                 # (L, Cin)    original input (residual path)
    dw = wdw_ref[...]                  # (5, Cin)

    # conv1: depthwise, kernel=5, padding=2 (VPU mul-adds), then ReLU.
    x2 = bdw_ref[...]                  # (1, Cin) -> broadcasts to (L, Cin)
    for k in range(5):
        x2 = x2 + xp[k:k + L, :] * dw[k:k + 1, :]
    x2 = jnp.maximum(x2, 0.0)

    # Apply conv3's stride here: every remaining op (conv2, residual, conv3)
    # is a 1x1 conv, so only the strided rows matter.  Compact them with a
    # small 0/1 selection matmul built from 2-D iotas (robust lowering, no
    # strided sublane slice / reshape needed).
    if stride > 1:
        r = jax.lax.broadcasted_iota(jnp.int32, (lout, L), 0)
        c = jax.lax.broadcasted_iota(jnp.int32, (lout, L), 1)
        sel = (c == r * stride).astype(jnp.float32)        # (Lout, L)
        x2 = jnp.dot(sel, x2, preferred_element_type=jnp.float32)   # (Lout, Cin)
        x = jnp.dot(sel, x, preferred_element_type=jnp.float32)     # (Lout, Cin)

    # conv2 (+ residual) + ReLU, then conv3 + ReLU -- all on Lout rows only.
    h = jnp.dot(x2, w2_ref[...], preferred_element_type=jnp.float32) + b2_ref[...]
    if has_residual:
        res = jnp.dot(x, wres_ref[...], preferred_element_type=jnp.float32) + bres_ref[...]
    else:
        res = x                        # identity residual; requires Cin == Cout
    z = jnp.maximum(h + res, 0.0)
    y = jnp.dot(z, w3_ref[...], preferred_element_type=jnp.float32) + b3_ref[...]
    out_ref[0] = jnp.maximum(y, 0.0)


def conv_block(x, params, *, stride, use_residual):
    """x: (B, L, Cin) channels-last.  Returns (B, Lout, Cout)."""
    B, L, cin = x.shape
    cout = params["w2"].shape[1]
    if not use_residual:
        assert cin == cout, "identity residual requires in_dim == out_dim"
    lout = (L - 1) // stride + 1       # Conv1d(kernel=1, stride) output length

    xp = jnp.pad(x, ((0, 0), (2, 2), (0, 0)))       # zero pad for conv1 (padding=2)

    ins = [xp, params["wdw"], params["bdw"], params["w2"], params["b2"]]
    specs = [_batch_spec((1, L + 4, cin)),
             _full_spec((5, cin)), _full_spec((1, cin)),
             _full_spec((cin, cout)), _full_spec((1, cout))]
    if use_residual:
        ins += [params["wres"], params["bres"]]
        specs += [_full_spec((cin, cout)), _full_spec((1, cout))]
    ins += [params["w3"], params["b3"]]
    specs += [_full_spec((cout, cout)), _full_spec((1, cout))]

    return pl.pallas_call(
        functools.partial(conv_block_kernel, stride, use_residual),
        out_shape=jax.ShapeDtypeStruct((B, lout, cout), jnp.float32),
        grid=(B,),
        in_specs=specs,
        out_specs=_batch_spec((1, lout, cout)),
        compiler_params=pltpu.CompilerParams(dimension_semantics=("parallel",)),
    )(*ins)


# ------------------------------------------------------- pure-JAX reference --
def conv_block_ref(x, params, *, stride, use_residual):
    B, L, cin = x.shape
    xp = jnp.pad(x, ((0, 0), (2, 2), (0, 0)))
    x2 = params["bdw"][None]                                  # (1, 1, Cin)
    for k in range(5):
        x2 = x2 + xp[:, k:k + L, :] * params["wdw"][k][None, None, :]
    x2 = jax.nn.relu(x2)
    h = x2 @ params["w2"] + params["b2"]
    res = (x @ params["wres"] + params["bres"]) if use_residual else x
    z = jax.nn.relu(h + res)
    zs = z[:, ::stride, :]
    return jax.nn.relu(zs @ params["w3"] + params["b3"])


# ------------------------------------------------------------------- params --
def init_conv_block_params(key, in_dim, out_dim, use_residual):
    keys = jax.random.split(key, 8)

    def w(k, shape, scale):
        return jax.random.normal(k, shape, jnp.float32) * scale

    p = {
        "wdw": w(keys[0], (5, in_dim), 1.0 / np.sqrt(5)),        # conv1.weight[:,0,:].T
        "bdw": w(keys[1], (1, in_dim), 0.05),                    # conv1.bias
        "w2": w(keys[2], (in_dim, out_dim), 1.0 / np.sqrt(in_dim)),   # conv2.weight[:,:,0].T
        "b2": w(keys[3], (1, out_dim), 0.05),
        "w3": w(keys[4], (out_dim, out_dim), 1.0 / np.sqrt(out_dim)),  # conv3.weight[:,:,0].T
        "b3": w(keys[5], (1, out_dim), 0.05),
    }
    if use_residual:
        p["wres"] = w(keys[6], (in_dim, out_dim), 1.0 / np.sqrt(in_dim))  # residual_conv
        p["bres"] = w(keys[7], (1, out_dim), 0.05)
    return p


# --------------------------------------------------------------------- main --
if __name__ == "__main__":
    key = jax.random.PRNGKey(0)
    k1, k2, kx1, kx2 = jax.random.split(key, 4)

    B, L = 2, 16

    # Config 1: residual 1x1 conv, stride 2 (like the widening Silero blocks).
    in1, out1 = 16, 32
    p1 = init_conv_block_params(k1, in1, out1, use_residual=True)
    x1 = jax.random.normal(kx1, (B, L, in1), jnp.float32)
    y1 = conv_block(x1, p1, stride=2, use_residual=True)
    r1 = conv_block_ref(x1, p1, stride=2, use_residual=True)

    # Config 2: identity residual (in_dim == out_dim), stride 1 (last block).
    in2 = out2 = 32
    p2 = init_conv_block_params(k2, in2, out2, use_residual=False)
    x2 = jax.random.normal(kx2, (B, L, in2), jnp.float32)
    y2 = conv_block(x2, p2, stride=1, use_residual=False)
    r2 = conv_block_ref(x2, p2, stride=1, use_residual=False)

    jax.block_until_ready((y1, y2))

    assert y1.shape == (B, (L - 1) // 2 + 1, out1)
    assert y2.shape == (B, L, out2)
    assert bool(jnp.all(jnp.isfinite(y1))) and bool(jnp.all(jnp.isfinite(y2)))
    assert bool(jnp.allclose(y1, r1, rtol=2e-2, atol=2e-2)), \
        f"max err {float(jnp.max(jnp.abs(y1 - r1)))}"
    assert bool(jnp.allclose(y2, r2, rtol=2e-2, atol=2e-2)), \
        f"max err {float(jnp.max(jnp.abs(y2 - r2)))}"
    print("KERNEL_OK")
</pallas_src>

<mosaic_0001>
module attributes {stable_mosaic.version = 11 : i64} {
  func.func @conv_block_kernel(%arg0: i32, %arg1: memref<1x20x16xf32, #tpu.memory_space<vmem>>, %arg2: memref<5x16xf32, #tpu.memory_space<vmem>>, %arg3: memref<1x16xf32, #tpu.memory_space<vmem>>, %arg4: memref<16x32xf32, #tpu.memory_space<vmem>>, %arg5: memref<1x32xf32, #tpu.memory_space<vmem>>, %arg6: memref<16x32xf32, #tpu.memory_space<vmem>>, %arg7: memref<1x32xf32, #tpu.memory_space<vmem>>, %arg8: memref<32x32xf32, #tpu.memory_space<vmem>>, %arg9: memref<1x32xf32, #tpu.memory_space<vmem>>, %arg10: memref<1x8x32xf32, #tpu.memory_space<vmem>>) attributes {dimension_semantics = [#tpu.dimension_semantics<parallel>], iteration_bounds = array<i64: 2>, scalar_prefetch = 0 : i64, scratch_operands = 0 : i64, tpu.core_type = #tpu.core_type<tc>, window_params = [{transform_indices = @transform_0, window_bounds = array<i64: 1, 20, 16>}, {pipeline_mode = #tpu.pipeline_mode<synchronous>, transform_indices = @transform_1, window_bounds = array<i64: 5, 16>}, {pipeline_mode = #tpu.pipeline_mode<synchronous>, transform_indices = @transform_2, window_bounds = array<i64: 1, 16>}, {pipeline_mode = #tpu.pipeline_mode<synchronous>, transform_indices = @transform_3, window_bounds = array<i64: 16, 32>}, {pipeline_mode = #tpu.pipeline_mode<synchronous>, transform_indices = @transform_4, window_bounds = array<i64: 1, 32>}, {pipeline_mode = #tpu.pipeline_mode<synchronous>, transform_indices = @transform_5, window_bounds = array<i64: 16, 32>}, {pipeline_mode = #tpu.pipeline_mode<synchronous>, transform_indices = @transform_6, window_bounds = array<i64: 1, 32>}, {pipeline_mode = #tpu.pipeline_mode<synchronous>, transform_indices = @transform_7, window_bounds = array<i64: 32, 32>}, {pipeline_mode = #tpu.pipeline_mode<synchronous>, transform_indices = @transform_8, window_bounds = array<i64: 1, 32>}, {transform_indices = @transform_9, window_bounds = array<i64: 1, 8, 32>}]} {
    %c0 = arith.constant 0 : index
    %c0_0 = arith.constant 0 : index
    %c0_1 = arith.constant 0 : index
    %0 = vector.load %arg1[%c0, %c0_0, %c0_1] : memref<1x20x16xf32, #tpu.memory_space<vmem>>, vector<1x20x16xf32>
    %1 = vector.shape_cast %0 : vector<1x20x16xf32> to vector<20x16xf32>
    %2 = vector.extract_strided_slice %1 {offsets = [2, 0], sizes = [16, 16], strides = [1, 1]} : vector<20x16xf32> to vector<16x16xf32>
    %c0_2 = arith.constant 0 : index
    %c0_3 = arith.constant 0 : index
    %3 = vector.load %arg2[%c0_2, %c0_3] : memref<5x16xf32, #tpu.memory_space<vmem>>, vector<5x16xf32>
    %c0_4 = arith.constant 0 : index
    %c0_5 = arith.constant 0 : index
    %4 = vector.load %arg3[%c0_4, %c0_5] : memref<1x16xf32, #tpu.memory_space<vmem>>, vector<1x16xf32>
    %5 = vector.extract_strided_slice %1 {offsets = [0, 0], sizes = [16, 16], strides = [1, 1]} : vector<20x16xf32> to vector<16x16xf32>
    %6 = vector.extract_strided_slice %3 {offsets = [0, 0], sizes = [1, 16], strides = [1, 1]} : vector<5x16xf32> to vector<1x16xf32>
    %7 = vector.broadcast %6 : vector<1x16xf32> to vector<16x16xf32>
    %8 = arith.mulf %5, %7 : vector<16x16xf32>
    %9 = vector.broadcast %4 : vector<1x16xf32> to vector<16x16xf32>
    %10 = arith.addf %9, %8 : vector<16x16xf32>
    %11 = vector.extract_strided_slice %1 {offsets = [1, 0], sizes = [16, 16], strides = [1, 1]} : vector<20x16xf32> to vector<16x16xf32>
    %12 = vector.extract_strided_slice %3 {offsets = [1, 0], sizes = [1, 16], strides = [1, 1]} : vector<5x16xf32> to vector<1x16xf32>
    %13 = vector.broadcast %12 : vector<1x16xf32> to vector<16x16xf32>
    %14 = arith.mulf %11, %13 : vector<16x16xf32>
    %15 = arith.addf %10, %14 : vector<16x16xf32>
    %16 = vector.extract_strided_slice %1 {offsets = [2, 0], sizes = [16, 16], strides = [1, 1]} : vector<20x16xf32> to vector<16x16xf32>
    %17 = vector.extract_strided_slice %3 {offsets = [2, 0], sizes = [1, 16], strides = [1, 1]} : vector<5x16xf32> to vector<1x16xf32>
    %18 = vector.broadcast %17 : vector<1x16xf32> to vector<16x16xf32>
    %19 = arith.mulf %16, %18 : vector<16x16xf32>
    %20 = arith.addf %15, %19 : vector<16x16xf32>
    %21 = vector.extract_strided_slice %1 {offsets = [3, 0], sizes = [16, 16], strides = [1, 1]} : vector<20x16xf32> to vector<16x16xf32>
    %22 = vector.extract_strided_slice %3 {offsets = [3, 0], sizes = [1, 16], strides = [1, 1]} : vector<5x16xf32> to vector<1x16xf32>
    %23 = vector.broadcast %22 : vector<1x16xf32> to vector<16x16xf32>
    %24 = arith.mulf %21, %23 : vector<16x16xf32>
    %25 = arith.addf %20, %24 : vector<16x16xf32>
    %26 = vector.extract_strided_slice %1 {offsets = [4, 0], sizes = [16, 16], strides = [1, 1]} : vector<20x16xf32> to vector<16x16xf32>
    %27 = vector.extract_strided_slice %3 {offsets = [4, 0], sizes = [1, 16], strides = [1, 1]} : vector<5x16xf32> to vector<1x16xf32>
    %28 = vector.broadcast %27 : vector<1x16xf32> to vector<16x16xf32>
    %29 = arith.mulf %26, %28 : vector<16x16xf32>
    %30 = arith.addf %25, %29 : vector<16x16xf32>
    %cst = arith.constant 0.000000e+00 : f32
    %31 = vector.broadcast %cst : f32 to vector<16x16xf32>
    %32 = arith.maximumf %30, %31 : vector<16x16xf32>
    %33 = tpu.iota {dimensions = array<i32: 0>} : vector<8x16xi32>
    %34 = tpu.iota {dimensions = array<i32: 1>} : vector<8x16xi32>
    %c2_i32 = arith.constant 2 : i32
    %35 = vector.broadcast %c2_i32 : i32 to vector<8x16xi32>
    %36 = arith.muli %33, %35 : vector<8x16xi32>
    %37 = arith.cmpi eq, %34, %36 : vector<8x16xi32>
    %38 = arith.extui %37 : vector<8x16xi1> to vector<8x16xi32>
    %39 = arith.sitofp %38 : vector<8x16xi32> to vector<8x16xf32>
    %cst_6 = arith.constant dense<0.000000e+00> : vector<8x16xf32>
    %40 = tpu.matmul %39, %32, %cst_6 {dimension_numbers = #tpu.dot_dimension_numbers<[1], [0], [0], [1], [0, 0, 1, 1], [], []>} : vector<8x16xf32>, vector<16x16xf32>, vector<8x16xf32> -> vector<8x16xf32>
    %cst_7 = arith.constant dense<0.000000e+00> : vector<8x16xf32>
    %41 = tpu.matmul %39, %2, %cst_7 {dimension_numbers = #tpu.dot_dimension_numbers<[1], [0], [0], [1], [0, 0, 1, 1], [], []>} : vector<8x16xf32>, vector<16x16xf32>, vector<8x16xf32> -> vector<8x16xf32>
    %c0_8 = arith.constant 0 : index
    %c0_9 = arith.constant 0 : index
    %42 = vector.load %arg4[%c0_8, %c0_9] : memref<16x32xf32, #tpu.memory_space<vmem>>, vector<16x32xf32>
    %cst_10 = arith.constant dense<0.000000e+00> : vector<8x32xf32>
    %43 = tpu.matmul %40, %42, %cst_10 {dimension_numbers = #tpu.dot_dimension_numbers<[1], [0], [0], [1], [0, 0, 1, 1], [], []>} : vector<8x16xf32>, vector<16x32xf32>, vector<8x32xf32> -> vector<8x32xf32>
    %c0_11 = arith.constant 0 : index
    %c0_12 = arith.constant 0 : index
    %44 = vector.load %arg5[%c0_11, %c0_12] : memref<1x32xf32, #tpu.memory_space<vmem>>, vector<1x32xf32>
    %45 = vector.broadcast %44 : vector<1x32xf32> to vector<8x32xf32>
    %46 = arith.addf %43, %45 : vector<8x32xf32>
    %c0_13 = arith.constant 0 : index
    %c0_14 = arith.constant 0 : index
    %47 = vector.load %arg6[%c0_13, %c0_14] : memref<16x32xf32, #tpu.memory_space<vmem>>, vector<16x32xf32>
    %cst_15 = arith.constant dense<0.000000e+00> : vector<8x32xf32>
    %48 = tpu.matmul %41, %47, %cst_15 {dimension_numbers = #tpu.dot_dimension_numbers<[1], [0], [0], [1], [0, 0, 1, 1], [], []>} : vector<8x16xf32>, vector<16x32xf32>, vector<8x32xf32> -> vector<8x32xf32>
    %c0_16 = arith.constant 0 : index
    %c0_17 = arith.constant 0 : index
    %49 = vector.load %arg7[%c0_16, %c0_17] : memref<1x32xf32, #tpu.memory_space<vmem>>, vector<1x32xf32>
    %50 = vector.broadcast %49 : vector<1x32xf32> to vector<8x32xf32>
    %51 = arith.addf %48, %50 : vector<8x32xf32>
    %52 = arith.addf %46, %51 : vector<8x32xf32>
    %cst_18 = arith.constant 0.000000e+00 : f32
    %53 = vector.broadcast %cst_18 : f32 to vector<8x32xf32>
    %54 = arith.maximumf %52, %53 : vector<8x32xf32>
    %c0_19 = arith.constant 0 : index
    %c0_20 = arith.constant 0 : index
    %55 = vector.load %arg8[%c0_19, %c0_20] : memref<32x32xf32, #tpu.memory_space<vmem>>, vector<32x32xf32>
    %cst_21 = arith.constant dense<0.000000e+00> : vector<8x32xf32>
    %56 = tpu.matmul %54, %55, %cst_21 {dimension_numbers = #tpu.dot_dimension_numbers<[1], [0], [0], [1], [0, 0, 1, 1], [], []>} : vector<8x32xf32>, vector<32x32xf32>, vector<8x32xf32> -> vector<8x32xf32>
    %c0_22 = arith.constant 0 : index
    %c0_23 = arith.constant 0 : index
    %57 = vector.load %arg9[%c0_22, %c0_23] : memref<1x32xf32, #tpu.memory_space<vmem>>, vector<1x32xf32>
    %58 = vector.broadcast %57 : vector<1x32xf32> to vector<8x32xf32>
    %59 = arith.addf %56, %58 : vector<8x32xf32>
    %cst_24 = arith.constant 0.000000e+00 : f32
    %60 = vector.broadcast %cst_24 : f32 to vector<8x32xf32>
    %61 = arith.maximumf %59, %60 : vector<8x32xf32>
    %c0_25 = arith.constant 0 : index
    %c0_26 = arith.constant 0 : index
    %c0_27 = arith.constant 0 : index
    %62 = vector.load %arg10[%c0_25, %c0_26, %c0_27] : memref<1x8x32xf32, #tpu.memory_space<vmem>>, vector<1x8x32xf32>
    %63 = vector.shape_cast %62 : vector<1x8x32xf32> to vector<8x32xf32>
    %64 = vector.shape_cast %61 : vector<8x32xf32> to vector<1x8x32xf32>
    tpu.vector_store %arg10[%c0_25, %c0_26, %c0_27], %64 {strides = array<i32>} : memref<1x8x32xf32, #tpu.memory_space<vmem>>, vector<1x8x32xf32>,
    return
  }
  func.func @transform_0(%arg0: i32) -> (i32, i32, i32) {
    %c0_i32 = arith.constant 0 : i32
    %c0_i32_0 = arith.constant 0 : i32
    %c0_i32_1 = arith.constant 0 : i32
    return %arg0, %c0_i32, %c0_i32_0 : i32, i32, i32
  }
  func.func @transform_1(%arg0: i32) -> (i32, i32) {
    %c0_i32 = arith.constant 0 : i32
    %c0_i32_0 = arith.constant 0 : i32
    %c0_i32_1 = arith.constant 0 : i32
    return %c0_i32, %c0_i32_0 : i32, i32
  }
  func.func @transform_2(%arg0: i32) -> (i32, i32) {
    %c0_i32 = arith.constant 0 : i32
    %c0_i32_0 = arith.constant 0 : i32
    %c0_i32_1 = arith.constant 0 : i32
    return %c0_i32, %c0_i32_0 : i32, i32
  }
  func.func @transform_3(%arg0: i32) -> (i32, i32) {
    %c0_i32 = arith.constant 0 : i32
    %c0_i32_0 = arith.constant 0 : i32
    %c0_i32_1 = arith.constant 0 : i32
    return %c0_i32, %c0_i32_0 : i32, i32
  }
  func.func @transform_4(%arg0: i32) -> (i32, i32) {
    %c0_i32 = arith.constant 0 : i32
    %c0_i32_0 = arith.constant 0 : i32
    %c0_i32_1 = arith.constant 0 : i32
    return %c0_i32, %c0_i32_0 : i32, i32
  }
  func.func @transform_5(%arg0: i32) -> (i32, i32) {
    %c0_i32 = arith.constant 0 : i32
    %c0_i32_0 = arith.constant 0 : i32
    %c0_i32_1 = arith.constant 0 : i32
    return %c0_i32, %c0_i32_0 : i32, i32
  }
  func.func @transform_6(%arg0: i32) -> (i32, i32) {
    %c0_i32 = arith.constant 0 : i32
    %c0_i32_0 = arith.constant 0 : i32
    %c0_i32_1 = arith.constant 0 : i32
    return %c0_i32, %c0_i32_0 : i32, i32
  }
  func.func @transform_7(%arg0: i32) -> (i32, i32) {
    %c0_i32 = arith.constant 0 : i32
    %c0_i32_0 = arith.constant 0 : i32
    %c0_i32_1 = arith.constant 0 : i32
    return %c0_i32, %c0_i32_0 : i32, i32
  }
  func.func @transform_8(%arg0: i32) -> (i32, i32) {
    %c0_i32 = arith.constant 0 : i32
    %c0_i32_0 = arith.constant 0 : i32
    %c0_i32_1 = arith.constant 0 : i32
    return %c0_i32, %c0_i32_0 : i32, i32
  }
  func.func @transform_9(%arg0: i32) -> (i32, i32, i32) {
    %c0_i32 = arith.constant 0 : i32
    %c0_i32_0 = arith.constant 0 : i32
    %c0_i32_1 = arith.constant 0 : i32
    return %arg0, %c0_i32, %c0_i32_0 : i32, i32, i32
  }
}

</mosaic_0001>

<bundles_post_ra>
// kernel: tpu_custom_call.1
= control target key start
LH: loop header
LB: loop body
LE: loop exit
PB: predicated region body
PF: predicated region fallthrough
CT: control target
= control target key end

     0   :  { %14 = vsyncpa [#allocation3], 0  ;;  %s1357_s0 = inlined_call_operand.vmem [shape: f32[2,20,16], index: 0, kind: input, shape index: {}]   ;;  %s1358_s1 = inlined_call_operand.vmem [shape: f32[5,16], index: 1, kind: input, shape index: {}]   ;;  %s1359_s2 = inlined_call_operand.vmem [shape: f32[1,16], index: 2, kind: input, shape index: {}]   ;;  %s1360_s3 = inlined_call_operand.vmem [shape: f32[16,32], index: 3, kind: input, shape index: {}]   ;;  %s1361_s4 = inlined_call_operand.vmem [shape: f32[1,32], index: 4, kind: input, shape index: {}]   ;;  %s1362_s5 = inlined_call_operand.vmem [shape: f32[16,32], index: 5, kind: input, shape index: {}]   ;;  %s1363_s6 = inlined_call_operand.vmem [shape: f32[1,32], index: 6, kind: input, shape index: {}]   ;;  %s1364_s7 = inlined_call_operand.vmem [shape: f32[32,32], index: 7, kind: input, shape index: {}]   ;;  %s1365_s8 = inlined_call_operand.vmem [shape: f32[1,32], index: 8, kind: input, shape index: {}]   ;;  %s1366_s9 = inlined_call_operand.hbm [shape: f32[2,8,32], index: 9, kind: output, shape index: {}]  }
   0x1   :  { %16 = vsyncpa [#allocation3 + $0x1], 0  ;;  %s1179_s30 = smov 0   ;;  %s1181_s10 = smov 0  }
   0x2   :  { %s1183_s11 = smov 0   ;;  %s1185_s12 = smov 0  }
   0x3 LB: > { %s1200_s13 = sadd.s32 4294967295, %s1123_s12   ;;  %s920_s14 = sadd.s32 4294967294, %s1123_s12   ;;  %s1123_s12 = sphi %s1185_s12, %s1372_s12   ;;  %s1119_s11 = sphi %s1183_s11, %s1371_s11   ;;  %s1115_s10 = sphi %s1181_s10, %s1370_s10   ;;  %s1111_s30 = sphi %s1179_s30, %s1369_s30  }
   0x4   : > { %s1204_s15 = sadd.s32 1, %s1123_s12   ;;  %s223_s16 = sadd.s32 1, %s1119_s11 }
   0x5   : > { %s220_s17 = ssub.s32 %s1123_s12, %s1204_s15  ;;  %p233_p0 = scmp.ne.s32.totalorder %s1119_s11, %s1115_s10 }
   0x6   : > { %p221_p1 = scmp.eq.s32.totalorder %s220_s17, 0  ;;  %p234_p2 = scmp.eq.s32.totalorder %s1200_s13, 1 }
   0x7   : > { %p239_p3 = scmp.ne.s32.totalorder %s1115_s10, %s1111_s30  ;;  %p240_p4 = scmp.eq.s32.totalorder %s920_s14, 1 }
   0x8   : > { %s1215_s18 = scalar_select %p221_p1, %s1119_s11, %s223_s16  }
   0x9   : > { %p1217_p5 = por %p234_p2, %p233_p0  ;;  %p1221_p6 = por %p240_p4, %p239_p3 }
   0xa   : > { %p923_p7 = scmp.ge.s32.totalorder %s1123_s12, 1  ;;  %p290_p8 = scmp.lt.s32.totalorder %s1123_s12, 3 }
   0xc   : > { %p291_p9 = pnand %p923_p7, %p290_p8 }
   0xd   : > { %p326_p10 = scmp.lt.s32.totalorder (!%p291_p9), %s1200_s13, 1  ;;  %v336_v0 = vlaneseq (!%p291_p9)  ;;  %v1125_v1 = vmov (!%p291_p9), 0.0|0.0   ;;  %v334_v3 = vld [vmem:[%s1358_s1] sm:$0x1f] (!%p291_p9)  ;;  %vm1126_vm0 = vmmov (!%p291_p9), 0   ;;  %v1127_v4 = vmov (!%p291_p9), 0.0  }
   0xe   : > { %294 = sbr.rel (%p291_p9) target bundleno = 714 (0x2ca), region = 56  ;;  %996 = vmatprep.subr.bf16.mxu0 (!%p291_p9), %v1125_v1  ;;  %999 = vmatprep.subr.bf16.mxu1 (!%p291_p9), %v1125_v1  ;;  %vm360_vm1 = vcmask (!%p291_p9), 1046528   ;;  %v926_v10 = vld [vmem:[%s1359_s2] ss:$0 sm:$0xff] (!%p291_p9)  ;;  %vm380_vm2 = vcmask (!%p291_p9), 1045504   ;;  %vm400_vm3 = vcmask (!%p291_p9), 1044480  }
   0xf   : > { %v1231_v2 = vshrl.u32 (!%p291_p9), %v336_v0, 7  ;;  %961 = vmatprep.mubr.msk.f32.mxu0 (!%p291_p9), %vm1126_vm0, %v1127_v4  ;;  %968 = vmatprep.mubr.msk.f32.mxu1 (!%p291_p9), %vm1126_vm0, %v1127_v4  ;;  %v435_v19 = vand.u32 (!%p291_p9), 127, %v336_v0  ;;  %vm420_vm4 = vcmask (!%p291_p9), 1043456   ;;  %vm440_vm6 = vcmask (!%p291_p9), 130048   ;;  %s323_s26 = sand.u32 (!%p291_p9), 1, %s1115_s10   ;;  %s937_s14 = sshll.u32 (!%p291_p9), %s1200_s13, 7 }
  0x10   : > { %vm771_vm7 = vcmask (!%p291_p9), 261120   ;;  %s1315_s23 = scalar_lea.hbm (!%p291_p9), %s1366_s9, %s937_s14 }
  0x11   : > { %v338_v5 = vsub.s32 (!%p291_p9), 0, %v1231_v2  ;;  %v352_v6 = vsub.s32 (!%p291_p9), 1, %v1231_v2  ;;  %v372_v7 = vsub.s32 (!%p291_p9), 2, %v1231_v2  ;;  %v392_v8 = vsub.s32 (!%p291_p9), 3, %v1231_v2 }
  0x12   : > { %v412_v9 = vsub.s32 (!%p291_p9), 4, %v1231_v2  ;;  %v436_v55 = vmul.u32 (!%p291_p9), 2, %v1231_v2 }
  0x13   : > { %v339_v11 = vrot.slane (!%p291_p9), %v334_v3, %v338_v5  ;;  %v353_v12 = vrot.slane (!%p291_p9), %v334_v3, %v352_v6  ;;  %v373_v13 = vrot.slane (!%p291_p9), %v334_v3, %v372_v7  ;;  %v393_v17 = vrot.slane (!%p291_p9), %v334_v3, %v392_v8 }
  0x14   : > { %v413_v18 = vrot.slane (!%p291_p9), %v334_v3, %v412_v9  ;;  %vm437_vm5 = vcmp.eq.s32.totalorder (!%p291_p9), %v435_v19, %v436_v55  ;;  %v676_v19 = vld [vmem:[%s1362_s5] sm:$0xff] (!%p291_p9) }
  0x15   : > { %s327_s21 = scalar_select %p326_p10, %s1200_s13, 1 }
  0x16   : > { %s1128_s13 = smov [#allocation2]  }
  0x17   : > { %s1018_s24 = smul.u32 24, %s327_s21 }
  0x19   : > { %s330_s27 = scalar_lea.vmem %s1357_s0, %s1018_s24  ;;  %s848_s24 = scalar_lea.sflag [#allocation3], %s323_s26 }
  0x1a   : > { %v331_v14 = vld [vmem:[%s330_s27] sm:$0xff]  ;;  %v332_v15 = vld [vmem:[%s330_s27 + $0x8] sm:$0xff]  ;;  %v333_v16 = vld [vmem:[%s330_s27 + $0x10] sm:$0xf]  ;;  %s924_s27 = sshll.u32 %s323_s26, 3 }
  0x1b   : > { %v340_v20 = vmul.f32 %v339_v11, %v331_v14  ;;  %v341_v21 = vmul.f32 %v339_v11, %v332_v15  ;;  %v354_v22 = vmul.f32 %v353_v12, %v331_v14  ;;  %v355_v23 = vmul.f32 %v353_v12, %v332_v15  ;;  %v594_v11 = vld [vmem:[%s1360_s3] sm:$0xff]  ;;  %s325_s16 = scalar_lea.vmem [#allocation2], %s924_s27  ;;  %s1065_s27 = sshll.u32 %s1128_s13, 4  ;;  %s1066_s27 = int_to_ptr.vmem [resolvable:$false] %s1065_s27 }
  0x1c   : > { %v356_v24 = vmul.f32 %v353_v12, %v333_v16  ;;  %v374_v25 = vmul.f32 %v373_v13, %v331_v14  ;;  %v375_v26 = vmul.f32 %v373_v13, %v332_v15  ;;  %v376_v27 = vmul.f32 %v373_v13, %v333_v16  ;;  %v595_v12 = vld [vmem:[%s1360_s3 + $0x8] sm:$0xff]  ;;  %s861_s17 = sshll.u32 %s325_s16, 4  ;;  %s1067_s28 = scalar_lea.vmem %s1066_s27, 256  ;;  %s1317_s17 = int_to_ptr.vmem [resolvable:$true] %s861_s17 }
  0x1d   : > { %v348_v28 = vadd.f32 %v926_v10, %v340_v20  ;;  %v349_v29 = vadd.f32 %v926_v10, %v341_v21  ;;  %v361_v30 = vrot.slane %v354_v22, 1  ;;  %v362_v31 = vrot.slane %v355_v23, 1  ;;  %v677_v20 = vld [vmem:[%s1362_s5 + $0x8] sm:$0xff]  ;;  %s1061_s25 = scalar_lea.vmem %s1317_s17, 128  ;;  %p1068_p0 = scmp.lt.s32.totalorder %s1317_s17, %s1066_s27 }
  0x1e   : > { %v364_v32 = vrot.slane %v356_v24, 1  ;;  %v381_v33 = vrot.slane %v374_v25, 2  ;;  %v382_v34 = vrot.slane %v375_v26, 2  ;;  %v384_v35 = vrot.slane %v376_v27, 2  ;;  %v763_v26 = vld [vmem:[%s1364_s7 + $0x18] sm:$0xff]  ;;  %p1062_p11 = scmp.ne.s32.totalorder %s1317_s17, %s1061_s25  ;;  %p1069_p1 = scmp.lt.s32.totalorder %s1067_s28, %s1061_s25 }
  0x1f   : > { %v363_v36 = vsel %vm360_vm1, %v361_v30, %v362_v31  ;;  %v394_v37 = vmul.f32 %v393_v17, %v331_v14  ;;  %v395_v38 = vmul.f32 %v393_v17, %v332_v15  ;;  %v396_v39 = vmul.f32 %v393_v17, %v333_v16  ;;  %v761_v17 = vld [vmem:[%s1364_s7 + $0x8] sm:$0xff] }
  0x20   : > { %v365_v40 = vsel %vm360_vm1, %v362_v31, %v364_v32  ;;  %v368_v41 = vadd.f32 %v363_v36, %v348_v28  ;;  %v383_v42 = vsel %vm380_vm2, %v381_v33, %v382_v34  ;;  %v385_v43 = vsel %vm380_vm2, %v382_v34, %v384_v35  ;;  %v930_v28 = vld [vmem:[%s1361_s4] ss:$0 sm:$0xff]  ;;  %p1063_p12 = pnand %p1062_p11, %p1217_p5  ;;  %p1070_p2 = por %p1069_p1, %p1068_p0 }
  0x21   : > { %v369_v44 = vadd.f32 %v365_v40, %v349_v29  ;;  %v401_v45 = vrot.slane %v394_v37, 3  ;;  %v402_v46 = vrot.slane %v395_v38, 3  ;;  %v404_v47 = vrot.slane %v396_v39, 3  ;;  %v934_v34 = vld [vmem:[%s1365_s8] ss:$0 sm:$0xff] }
  0x22   : > { %v388_v48 = vadd.f32 %v383_v42, %v368_v41  ;;  %v414_v49 = vmul.f32 %v413_v18, %v331_v14  ;;  %v415_v50 = vmul.f32 %v413_v18, %v332_v15  ;;  %v416_v51 = vmul.f32 %v413_v18, %v333_v16  ;;  %p1064_p13 = pneg %p1063_p12 }
  0x23   : > { %v389_v52 = vadd.f32 %v385_v43, %v369_v44  ;;  %v403_v53 = vsel %vm400_vm3, %v401_v45, %v402_v46  ;;  %v405_v54 = vsel %vm400_vm3, %v402_v46, %v404_v47  ;;  %v517_v61 = vrot.slane %v331_v14, 2 }
  0x24   : > { %v408_v56 = vadd.f32 %v403_v53, %v388_v48  ;;  %v421_v57 = vrot.slane %v414_v49, 4  ;;  %v422_v58 = vrot.slane %v415_v50, 4  ;;  %v424_v59 = vrot.slane %v416_v51, 4  ;;  %p1071_p3 = pnand %p1070_p2, %p1064_p13 }
  0x25   : > { %v409_v60 = vadd.f32 %v405_v54, %v389_v52  ;;  %v518_v62 = vrot.slane %v332_v15, 2  ;;  %v520_v63 = vrot.slane %v333_v16, 2  ;;  %v927_v14 = vsel %vm437_vm5, 1.0, %v1127_v4  ;;  %v760_v16 = vld [vmem:[%s1364_s7] sm:$0xff] }
  0x26   : > { %v423_v0 = vsel %vm420_vm4, %v421_v57, %v422_v58  ;;  %v425_v3 = vsel %vm420_vm4, %v422_v58, %v424_v59  ;;  %v1003_v15 = vpack.c.bf16 %v595_v12, %v594_v11  ;;  %v1009_v18 = vpack.c.bf16 %v761_v17, %v760_v16 }
  0x27   : > { %v428_v5 = vadd.f32 %v423_v0, %v408_v56  ;;  %v429_v6 = vadd.f32 %v425_v3, %v409_v60  ;;  %v519_v7 = vsel %vm380_vm2, %v517_v61, %v518_v62  ;;  %v521_v8 = vsel %vm380_vm2, %v518_v62, %v520_v63 }
  0x28   : > { %v1000_v9 = vpack.c.bf16 %v521_v8, %v519_v7  ;;  %v1006_v22 = vpack.c.bf16 %v677_v20, %v676_v19 }
  0x29   : > { %v430_v2 = vmax.f32 %v428_v5, 0.0  ;;  %v431_v10 = vmax.f32 %v429_v6, 0.0 }
  0x2a   : > { %1001 = vmatpush3.bf16.msra.mxu1 %v1000_v9 }
  0x2b   : > { %v997_v13 = vpack.c.bf16 %v431_v10, %v430_v2  ;;  %1008 = vmatprep.subr.bf16.mxu1 %v1125_v1 }
  0x2d   : > { %998 = vmatpush3.bf16.msra.mxu0 %v997_v13  ;;  %969 = vmatmul.mubr.msk.f32.vlgmr.msra.gmra.mrb[0].mxu1 %vm440_vm6, %v927_v14 }
  0x2e   : > { %1002 = vmatprep.subr.bf16.mxu0 %v1125_v1  ;;  %993 = vmatprep.mubr.msk.f32.mxu1 %vm1126_vm0, %v1127_v4 }
  0x2f   : > { %1010 = vmatpush3.bf16.msra.mxu1 %v1009_v18 }
  0x30   : > { %962 = vmatmul.mubr.msk.f32.vlgmr.msra.gmra.mrb[0].mxu0 %vm440_vm6, %v927_v14  ;;  %1011 = vmatprep.subr.bf16.mxu1 %v1125_v1 }
  0x31   : > { %1004 = vmatpush3.bf16.msra.mxu0 %v1003_v15  ;;  %975 = vmatprep.mubr.msk.f32.mxu0 %vm1126_vm0, %v1127_v4 }
  0x32   : > { %1005 = vmatprep.subr.bf16.mxu0 %v1125_v1  ;;  %v762_v1 = vld [vmem:[%s1364_s7 + $0x10] sm:$0xff] }
  0x33   : > { %v1012_v27 = vpack.c.bf16 %v763_v26, %v762_v1 }
  0x35   : > { %1013 = vmatpush3.bf16.msra.mxu1 %v1012_v27 }
 0x100   : > { %v590_v21 = vpop.f32.mrb[0].mxu1 }
 0x101   : > { %v970_v23 = vpop.f32.mrb[1].mxu1 }
 0x103   : > { %v510_v24 = vpop.f32.mrb[0].mxu0 }
 0x104   : > { %v963_v25 = vpop.f32.mrb[1].mxu0  ;;  %976 = vmatmul.mubr.msk.f32.vlgmr.msra.gmra.mrb[2].mxu0 %vm440_vm6, %v510_v24 }
 0x105   : > { %1007 = vmatpush3.bf16.msra.mxu0 %v1006_v22  ;;  %982 = vmatprep.mubr.msk.f32.mxu0 %vm1126_vm0, %v1127_v4  ;;  %v932_v4 = vld [vmem:[%s1363_s6] ss:$0 sm:$0xff] }
 0x106   : > { %v1014_v29 = vadd.f32 %v932_v4, %v930_v28 }
 0x10c   : > { %983 = vmatmul.mubr.msk.f32.vlgmr.msra.gmra.mrb[2].mxu0 %vm440_vm6, %v590_v21 }
 0x1df   : > { %v754_v30 = vpop.f32.mrb[2].mxu0 }
 0x1e0   : > { %v1015_v31 = vadd.f32 %v1014_v29, %v754_v30  ;;  %v984_v32 = vpop.f32.mrb[3].mxu0 }
 0x1e2   : > { %v759_v33 = vmax.f32 %v1015_v31, 0.0 }
 0x1e4   : > { %994 = vmatmul.mubr.msk.f32.vlgmr.msra.gmra.mrb[2].mxu1 %vm771_vm7, %v759_v33 }
 0x2b7   : > { %v841_v35 = vpop.f32.mrb[2].mxu1 }
 0x2b8   : > { %v842_v36 = vadd.f32 %v934_v34, %v841_v35  ;;  %v995_v37 = vpop.f32.mrb[3].mxu1 }
 0x2ba   : > { %v845_v38 = vmax.f32 %v842_v36, 0.0 }
 0x2bc   : > { %846 = vst.msk [vmem:[%s325_s16] sm:$0xff] %vm771_vm7, %v845_v38 }
 0x2bd   : > { %1074 = shalt.err (!%p1071_p3)
}
 0x2be   : > { %s1075_s26 = scalar_lea.hbm %s1315_s23, 128  ;;  %s1079_s16 = scalar_lea.hbm %s1366_s9, 256 }
 0x2bf   : > { %p1076_p4 = scmp.ne.s32.totalorder %s1315_s23, %s1075_s26  ;;  %p1080_p9 = scmp.lt.u32.totalorder %s1315_s23, %s1366_s9 }
 0x2c0   : > { %p1081_p10 = scmp.lt.u32.totalorder %s1079_s16, %s1075_s26  ;;  %p1083_p12 = scmp.lt.u32.totalorder %s1075_s26, %s1315_s23 }
 0x2c1   : > { %p1077_p7 = pnand %p1076_p4, %p1217_p5 }
 0x2c2   : > { %p1082_p11 = por %p1081_p10, %p1080_p9 }
 0x2c3   : > { %p1078_p8 = pneg %p1077_p7 }
 0x2c4   : > { %p1084_p13 = por %p1083_p12, %p1082_p11 }
 0x2c6   : > { %p1085_p0 = pnand %p1084_p13, %p1078_p8 }
 0x2c8   : > { %1088 = shalt.err (!%p1085_p0)
}
 0x2c9   : > { %1019 = dma.vmem_to_hbm [thread:$0]  (%p1217_p5), %s1317_s17, 128, %s1315_s23, %s848_s24  }
 0x2ca PF: > { %p1025_p1 = scmp.ge.s32.totalorder %s1123_s12, 2  ;;  %s873_s25 = sand.u32 1, %s1111_s30  }
 0x2cb   : > { %s874_s13 = scalar_lea.sflag [#allocation3], %s873_s25 }
 0x2cc   : > { %p1022_p2 = pnand %p1025_p1, %p1221_p6 }
 0x2ce   : > { %1106 = dma.done.wait (!%p1022_p2), %s874_s13, 128  }
 0x2cf   : > { %1108 = vsyncadd (!%p1022_p2), %s874_s13, 4294967168  ;;  %p19_p3 = scmp.ge.s32.totalorder %s1204_s15, 4   ;;  %s1369_s30 = smov %s1115_s10 }
 0x2d0   : > { %s1370_s10 = smov %s1119_s11  ;;  %s1371_s11 = smov %s1215_s18 }
 0x2d1   : > { %s1372_s12 = smov %s1204_s15  ;;  %21 = sbr.rel (!%p19_p3) target bundleno = 3 (0x3), region = 91 }
 0x2d8   :  { %879 = vsyncpa [#allocation3], 1 }
 0x2d9   :  { %881 = vsyncpa [#allocation3 + $0x1], 1 }

</bundles_post_ra>
